<compile_context>
chip_gen: v7x
topology: tpu7x:2x2x1
jax: 0.10.0
libtpu: 0.0.40
codegen_flags: <defaults>
</compile_context>

<pallas_src>
import jax
import jax.numpy as jnp
from jax.experimental import pallas as pl
from jax.experimental.pallas import tpu as pltpu

EPS = 1e-5  # nn.InstanceNorm2d default


def _vmem_limit_bytes():
    """Per-generation scoped-VMEM limit with headroom.

    v5e/v6e have 128 MiB physical VMEM -> raise the limit to 64 MiB so large
    double-buffered blocks fit; v7x has only 64 MiB physical -> cap at ~48 MiB.
    """
    cap = 128 * 1024 * 1024
    try:
        cap = int(pltpu.get_tpu_info().vmem_capacity_bytes)
    except Exception:
        pass  # fall back to the v5e/v6e capacity if the query is unavailable
    return min(64 * 1024 * 1024, (cap * 3) // 4)


def _c_align(dtype):
    """Second-to-last block-dim alignment: (8,128) f32, (16,128) bf16, (32,128) int8."""
    return max(8, 32 // jnp.dtype(dtype).itemsize)


def _pick_tiles(N, C, HW, dtype, vmem_limit):
    """Pick (n_tile, c_tile) so each grid step streams a large, VMEM-safe block."""
    itemsize = jnp.dtype(dtype).itemsize
    align = _c_align(dtype)
    # VMEM bytes consumed per block element: double-buffered input + output
    # (itemsize each) plus ~2 f32 temporaries live inside the kernel body.
    per_elem = 4 * itemsize + 2 * 4
    budget_elems = max(1, (vmem_limit * 3 // 4) // per_elem)

    # Channel tile: full C if it fits, else the largest aligned multiple that does.
    if C * HW <= budget_elems:
        c_tile = C
    else:
        c_tile = min(C, max(align, (budget_elems // HW) // align * align))
        if c_tile * HW > budget_elems:
            # Even the minimal aligned channel tile blows the VMEM budget.
            # TODO(synk): add a spatial "arbitrary" grid axis with sum/sumsq
            # accumulators for very large feature maps (e.g. 1024x1024).
            raise NotImplementedError(
                "Spatial extent too large for a single-block reduction: "
                f"minimal tile needs {c_tile * HW * per_elem} VMEM bytes "
                f"(limit {vmem_limit})."
            )

    # Sample tile: if the whole channel dim fits, amortize the ~0.35us per-step
    # overhead by grouping samples (matters for small H*W / early layers).
    n_tile = 1
    if c_tile == C:
        for cand in range(N, 0, -1):
            if N % cand == 0 and cand * C * HW <= budget_elems:
                n_tile = cand
                break

    # Megacore (v7x has 2 TensorCores): ensure the parallel grid exposes at
    # least 2 iterations whenever the problem allows it.
    if (N // n_tile) * pl.cdiv(C, c_tile) == 1:
        if N >= 2:
            for cand in range(N // 2, 0, -1):
                if N % cand == 0:
                    n_tile = cand
                    break
        elif C > align:
            half = pl.cdiv(pl.cdiv(C, 2), align) * align
            if align <= half < C:
                c_tile = half

    return n_tile, c_tile


def adain_kernel(x_ref, gb_ref, o_ref):
    # x_ref : (n_tile, c_tile, HW)  activation block (lane-dense spatial dim)
    # gb_ref: (n_tile, c_tile, 2)   packed (gamma, beta) for these rows
    x = x_ref[...].astype(jnp.float32)
    hw = x.shape[-1]

    # Single-pass statistics: sum / sum-of-squares, biased variance.
    # var = E[x^2] - mean^2 in f32 (fine for normalized StyleGAN activations;
    # deviates from the two-pass formulation only by f32 rounding).
    inv_hw = jnp.float32(1.0 / hw)
    mean = jnp.sum(x, axis=-1, keepdims=True) * inv_hw
    ex2 = jnp.sum(x * x, axis=-1, keepdims=True) * inv_hw
    var = ex2 - mean * mean

    gamma = gb_ref[..., 0:1].astype(jnp.float32)
    beta = gb_ref[..., 1:2].astype(jnp.float32)

    # Fold gamma into the rsqrt scale and the mean into the shift so the
    # epilogue is a single fused multiply-add pass over x (no x-mean temp).
    scale = gamma * jax.lax.rsqrt(var + EPS)
    shift = beta - mean * scale
    o_ref[...] = (x * scale + shift).astype(o_ref.dtype)


def adaptive_instance_norm(x, style, weight, bias):
    """x: (N, C, H, W), style: (N, D), weight: (2C, D), bias: (2C,)."""
    N, C, H, W = x.shape
    D = style.shape[-1]
    HW = H * W

    # EqualLinear (EqualLearningRate): effective weight = weight * sqrt(2/fan_in).
    # One batched XLA matmul covers all N samples -- stays out of the kernel.
    w_eff = weight.astype(jnp.float32) * jnp.sqrt(jnp.float32(2.0 / D))
    style_out = style.astype(jnp.float32) @ w_eff.T + bias.astype(jnp.float32)
    gamma = style_out[:, :C]                      # (N, C)
    beta = style_out[:, C:]                       # (N, C)
    # Pack gamma/beta into one (N, C, 2) array -> one small DMA per grid step.
    gb = jnp.stack([gamma, beta], axis=-1)

    # Free reshape for contiguous NCHW: lane-dense last dim of H*W.
    x3 = x.reshape(N, C, HW)

    vmem_limit = _vmem_limit_bytes()
    n_tile, c_tile = _pick_tiles(N, C, HW, x.dtype, vmem_limit)
    grid = (N // n_tile, pl.cdiv(C, c_tile))

    out3 = pl.pallas_call(
        adain_kernel,
        out_shape=jax.ShapeDtypeStruct((N, C, HW), x.dtype),
        grid_spec=pltpu.PrefetchScalarGridSpec(
            num_scalar_prefetch=0,
            grid=grid,
            in_specs=[
                pl.BlockSpec((n_tile, c_tile, HW), lambda n, c: (n, c, 0)),
                pl.BlockSpec((n_tile, c_tile, 2), lambda n, c: (n, c, 0)),
            ],
            out_specs=pl.BlockSpec((n_tile, c_tile, HW), lambda n, c: (n, c, 0)),
        ),
        compiler_params=pltpu.CompilerParams(
            dimension_semantics=("parallel", "parallel"),
            vmem_limit_bytes=vmem_limit,
        ),
    )(x3, gb)

    return out3.reshape(N, C, H, W)


def reference_adain(x, style, weight, bias):
    """Pure-JAX reference mirroring the PyTorch forward exactly."""
    N, C, H, W = x.shape
    D = style.shape[-1]
    w_eff = weight * jnp.sqrt(2.0 / D)
    style_out = style @ w_eff.T + bias                     # (N, 2C)
    gamma = style_out[:, :C].reshape(N, C, 1, 1)
    beta = style_out[:, C:].reshape(N, C, 1, 1)
    mean = jnp.mean(x, axis=(2, 3), keepdims=True)
    var = jnp.mean(jnp.square(x - mean), axis=(2, 3), keepdims=True)
    out = (x - mean) / jnp.sqrt(var + EPS)
    return gamma * out + beta


if __name__ == "__main__":
    N, C, H, W = 2, 4, 16, 16
    style_dim = 32

    key = jax.random.PRNGKey(0)
    k_x, k_s, k_w = jax.random.split(key, 3)

    x = jax.random.normal(k_x, (N, C, H, W), dtype=jnp.float32)
    style = jax.random.normal(k_s, (N, style_dim), dtype=jnp.float32)

    # EqualLinear init: weight ~ N(0, 1); bias[:C] = 1, bias[C:] = 0.
    weight = jax.random.normal(k_w, (2 * C, style_dim), dtype=jnp.float32)
    bias = jnp.concatenate(
        [jnp.ones((C,), jnp.float32), jnp.zeros((C,), jnp.float32)]
    )

    out = adaptive_instance_norm(x, style, weight, bias)
    out = jax.block_until_ready(out)

    ref = reference_adain(x, style, weight, bias)
    assert out.shape == (N, C, H, W)
    assert jnp.allclose(out, ref, atol=1e-4, rtol=1e-4), "mismatch vs reference"

    print("KERNEL_OK")
</pallas_src>

<mosaic_0001>
module attributes {stable_mosaic.version = 11 : i64} {
  func.func @adain_kernel(%arg0: i32, %arg1: i32, %arg2: memref<1x4x256xf32, #tpu.memory_space<vmem>>, %arg3: memref<1x4x2xf32, #tpu.memory_space<vmem>>, %arg4: memref<1x4x256xf32, #tpu.memory_space<vmem>>) attributes {dimension_semantics = [#tpu.dimension_semantics<parallel>, #tpu.dimension_semantics<parallel>], iteration_bounds = array<i64: 2, 1>, scalar_prefetch = 0 : i64, scratch_operands = 0 : i64, tpu.core_type = #tpu.core_type<tc>, window_params = [{transform_indices = @transform_0, window_bounds = array<i64: 1, 4, 256>}, {transform_indices = @transform_1, window_bounds = array<i64: 1, 4, 2>}, {transform_indices = @transform_2, window_bounds = array<i64: 1, 4, 256>}]} {
    %c0 = arith.constant 0 : index
    %c0_0 = arith.constant 0 : index
    %c0_1 = arith.constant 0 : index
    %0 = vector.load %arg2[%c0, %c0_0, %c0_1] : memref<1x4x256xf32, #tpu.memory_space<vmem>>, vector<1x4x256xf32>
    %cst = arith.constant dense<0.000000e+00> : vector<1x4xf32>
    %1 = vector.multi_reduction <add>, %0, %cst [2] : vector<1x4x256xf32> to vector<1x4xf32>
    %2 = vector.shape_cast %1 : vector<1x4xf32> to vector<1x4x1xf32>
    %cst_2 = arith.constant 3.906250e-03 : f32
    %3 = vector.broadcast %cst_2 : f32 to vector<1x4x1xf32>
    %4 = arith.mulf %2, %3 : vector<1x4x1xf32>
    %5 = arith.mulf %0, %0 : vector<1x4x256xf32>
    %cst_3 = arith.constant dense<0.000000e+00> : vector<1x4xf32>
    %6 = vector.multi_reduction <add>, %5, %cst_3 [2] : vector<1x4x256xf32> to vector<1x4xf32>
    %7 = vector.shape_cast %6 : vector<1x4xf32> to vector<1x4x1xf32>
    %cst_4 = arith.constant 3.906250e-03 : f32
    %8 = vector.broadcast %cst_4 : f32 to vector<1x4x1xf32>
    %9 = arith.mulf %7, %8 : vector<1x4x1xf32>
    %10 = arith.mulf %4, %4 : vector<1x4x1xf32>
    %11 = arith.subf %9, %10 : vector<1x4x1xf32>
    %c0_5 = arith.constant 0 : index
    %c0_6 = arith.constant 0 : index
    %c0_7 = arith.constant 0 : index
    %12 = vector.load %arg3[%c0_5, %c0_6, %c0_7] : memref<1x4x2xf32, #tpu.memory_space<vmem>>, vector<1x4x1xf32>
    %c0_8 = arith.constant 0 : index
    %c0_9 = arith.constant 0 : index
    %c1 = arith.constant 1 : index
    %13 = vector.load %arg3[%c0_8, %c0_9, %c1] : memref<1x4x2xf32, #tpu.memory_space<vmem>>, vector<1x4x1xf32>
    %cst_10 = arith.constant 9.99999974E-6 : f32
    %14 = vector.broadcast %cst_10 : f32 to vector<1x4x1xf32>
    %15 = arith.addf %11, %14 : vector<1x4x1xf32>
    %16 = math.rsqrt %15 : vector<1x4x1xf32>
    %17 = arith.mulf %12, %16 : vector<1x4x1xf32>
    %18 = arith.mulf %4, %17 : vector<1x4x1xf32>
    %19 = arith.subf %13, %18 : vector<1x4x1xf32>
    %20 = vector.broadcast %17 : vector<1x4x1xf32> to vector<1x4x256xf32>
    %21 = arith.mulf %0, %20 : vector<1x4x256xf32>
    %22 = vector.broadcast %19 : vector<1x4x1xf32> to vector<1x4x256xf32>
    %23 = arith.addf %21, %22 : vector<1x4x256xf32>
    %c0_11 = arith.constant 0 : index
    %c0_12 = arith.constant 0 : index
    %c0_13 = arith.constant 0 : index
    %24 = vector.load %arg4[%c0_11, %c0_12, %c0_13] : memref<1x4x256xf32, #tpu.memory_space<vmem>>, vector<1x4x256xf32>
    tpu.vector_store %arg4[%c0_11, %c0_12, %c0_13], %23 {strides = array<i32>} : memref<1x4x256xf32, #tpu.memory_space<vmem>>, vector<1x4x256xf32>,
    return
  }
  func.func @transform_0(%arg0: i32, %arg1: i32) -> (i32, i32, i32) {
    %c0_i32 = arith.constant 0 : i32
    %c0_i32_0 = arith.constant 0 : i32
    return %arg0, %arg1, %c0_i32 : i32, i32, i32
  }
  func.func @transform_1(%arg0: i32, %arg1: i32) -> (i32, i32, i32) {
    %c0_i32 = arith.constant 0 : i32
    %c0_i32_0 = arith.constant 0 : i32
    return %arg0, %arg1, %c0_i32 : i32, i32, i32
  }
  func.func @transform_2(%arg0: i32, %arg1: i32) -> (i32, i32, i32) {
    %c0_i32 = arith.constant 0 : i32
    %c0_i32_0 = arith.constant 0 : i32
    return %arg0, %arg1, %c0_i32 : i32, i32, i32
  }
}

</mosaic_0001>

<bundles_post_ra>
// kernel: tpu_custom_call.1
= control target key start
LH: loop header
LB: loop body
LE: loop exit
PB: predicated region body
PF: predicated region fallthrough
CT: control target
= control target key end

     0   :  { %7 = vsyncpa [#allocation3], 0  ;;  %s888_s0 = inlined_call_operand.hbm [shape: f32[2,4,256], index: 0, kind: input, shape index: {}]   ;;  %s889_s1 = inlined_call_operand.hbm [shape: f32[2,4,2], index: 1, kind: input, shape index: {}]   ;;  %s890_s2 = inlined_call_operand.hbm [shape: f32[2,4,256], index: 2, kind: output, shape index: {}]  }
   0x1   :  { %9 = vsyncpa [#allocation3 + $0x1], 0 }
   0x2   :  { %10 = vsyncpa [#allocation6], 0 }
   0x3   :  { %12 = vsyncpa [#allocation6 + $0x1], 0 }
   0x4   :  { %13 = vsyncpa [#allocation4], 0 }
   0x5   :  { %15 = vsyncpa [#allocation4 + $0x1], 0  ;;  %s669_s9 = smov 0   ;;  %s671_s10 = smov 0  }
   0x6   :  { %s673_s11 = smov 0   ;;  %s675_s12 = smov 0  }
   0x7   :  { %s677_s13 = smov 0   ;;  %s679_s14 = smov 0  }
   0x8 LB: > { %s403_s15 = sadd.s32 4294967295, %s645_s14   ;;  %s404_s16 = sadd.s32 4294967294, %s645_s14   ;;  %s645_s14 = sphi %s679_s14, %s21_s14   ;;  %s641_s13 = sphi %s677_s13, %s910_s13   ;;  %s637_s12 = sphi %s675_s12, %s909_s12   ;;  %s633_s11 = sphi %s673_s11, %s908_s11   ;;  %s629_s10 = sphi %s671_s10, %s907_s10   ;;  %s625_s9 = sphi %s669_s9, %s906_s9  }
   0x9   : > { %s33_s17 = sadd.s32 1, %s641_s13  ;;  %s42_s18 = sadd.s32 1, %s633_s11 }
   0xa   : > { %p35_p0 = scmp.ge.s32.totalorder %s33_s17, 2  ;;  %p49_p1 = scmp.ne.s32.totalorder %s633_s11, %s629_s10 }
   0xb   : > { %p50_p2 = scmp.eq.s32.totalorder %s645_s14, 0  ;;  %p55_p3 = scmp.ne.s32.totalorder %s629_s10, %s625_s9 }
   0xc   : > { %s912_s17 = smov (%p35_p0, %s33_s17), 0  ;;  %p56_p5 = scmp.eq.s32.totalorder %s403_s15, 0 }
   0xd   : > { %p710_p4 = por %p50_p2, %p49_p1  ;;  %s37_s20 = ssub.s32 %s641_s13, %s912_s17 }
   0xe   : > { %p109_p6 = scmp.eq.s32.totalorder %s403_s15, 1  ;;  %p40_p7 = scmp.eq.s32.totalorder %s37_s20, 0 }
   0xf   : > { %p716_p8 = por %p56_p5, %p55_p3  ;;  %p115_p10 = scmp.eq.s32.totalorder %s404_s16, 1 }
  0x10   : > { %p720_p9 = por %p109_p6, %p49_p1  ;;  %p440_p13 = scmp.lt.s32.totalorder %s645_s14, 2 }
  0x11   : > { %s894_s21 = scalar_select %p716_p8, 1, 0 }
  0x12   : > { %s895_s22 = scalar_select %p720_p9, 1, 0 }
  0x13   : > { %s725_s23 = scalar_select %p40_p7, %s633_s11, %s42_s18  }
  0x14   : > { %p727_p11 = por %p115_p10, %p55_p3  ;;  %s734_s25 = sand.u32 1, %s633_s11  }
  0x15   : > { %s407_s26 = sshll.u32 %s734_s25, 3  ;;  %s421_s27 = sshll.u32 %s641_s13, 7 }
  0x16   : > { %s896_s24 = scalar_select %p727_p11, 1, 0 }
  0x17   : > { %s741_s30 = scalar_lea.hbm %s888_s0, %s421_s27  ;;  %s139_s3 = scalar_lea.vmem [#allocation2], %s407_s26 }
  0x18   : > { %s149_s4 = sshll.u32 %s139_s3, 4  ;;  %p747_p0 = pnand %p440_p13, %p710_p4  ;;  %s743_s4 = int_to_ptr.vmem [resolvable:$true] %s149_s4 }
  0x19   : > { %s136_s6 = scalar_lea.sflag [#allocation3], %s734_s25  ;;  %s499_s7 = scalar_lea.hbm %s741_s30, 128 }
  0x1a   : > { %p500_p3 = scmp.ne.s32.totalorder %s741_s30, %s499_s7  ;;  %p501_p5 = pneg %p747_p0 }
  0x1b   : > { %s504_s16 = scalar_lea.hbm %s888_s0, 256  ;;  %p505_p4 = scmp.lt.u32.totalorder %s741_s30, %s888_s0 }
  0x1c   : > { %p502_p6 = pnand %p501_p5, %p500_p3  ;;  %p506_p10 = scmp.lt.u32.totalorder %s504_s16, %s499_s7 }
  0x1d   : > { %p508_p12 = scmp.lt.u32.totalorder %s499_s7, %s741_s30 }
  0x1e   : > { %p503_p7 = pneg %p502_p6  ;;  %p507_p13 = por %p506_p10, %p505_p4 }
  0x20   : > { %p509_p1 = por %p508_p12, %p507_p13 }
  0x22   : > { %p510_p2 = pnand %p509_p1, %p503_p7 }
  0x24   : > { %513 = shalt.err (!%p510_p2)
}
  0x25   : > { %s514_s20 = scalar_lea.vmem %s743_s4, 128  ;;  %s647_s26 = smov [#allocation2]  }
  0x26   : > { %p515_p3 = scmp.ne.s32.totalorder %s743_s4, %s514_s20  ;;  %s519_s27 = sshll.u32 %s647_s26, 4  ;;  %s520_s27 = int_to_ptr.vmem [resolvable:$false] %s519_s27 }
  0x27   : > { %s521_s28 = scalar_lea.vmem %s520_s27, 256  ;;  %p522_p9 = scmp.lt.s32.totalorder %s743_s4, %s520_s27 }
  0x28   : > { %p517_p6 = pnand %p515_p3, %p501_p5  ;;  %p523_p4 = scmp.lt.s32.totalorder %s521_s28, %s514_s20 }
  0x2a   : > { %p518_p11 = pneg %p517_p6  ;;  %p524_p10 = por %p523_p4, %p522_p9 }
  0x2c   : > { %p525_p12 = pnand %p524_p10, %p518_p11 }
  0x2e   : > { %528 = shalt.err (!%p525_p12)
}
  0x2f   : > { %432 = dma.hbm_to_vmem [thread:$0]  (!%p747_p0), %s741_s30, 128, %s743_s4, %s136_s6  }
  0x30   : > { %p898_p1 = scmp.lt.s32.totalorder %s645_s14, 3  ;;  %p899_p2 = scmp.ge.s32.totalorder %s645_s14, 1 }
  0x31   : > { %s410_s3 = sshll.u32 %s734_s25, 2  ;;  %s411_s7 = sshll.u32 %s641_s13, 6 }
  0x32   : > { %p783_p7 = pnand %p899_p2, %p898_p1  ;;  %s792_s16 = scalar_lea.hbm %s889_s1, %s411_s7 }
  0x33   : > { %s160_s18 = scalar_lea.vmem [#allocation5], %s410_s3  ;;  %s157_s30 = scalar_lea.sflag [#allocation6], %s734_s25 }
  0x34   : > { %s900_s29 = scalar_select %p783_p7, 1, 0 }
  0x35   : > { %s168_s19 = sshll.u32 %s160_s18, 4  ;;  %s529_s4 = scalar_lea.hbm %s792_s16, 64  ;;  %s169_s19 = int_to_ptr.vmem [resolvable:$true] %s168_s19 }
  0x36   : > { %p530_p9 = scmp.ne.s32.totalorder %s792_s16, %s529_s4  ;;  %s534_s26 = scalar_lea.hbm %s889_s1, 128 }
  0x37   : > { %p535_p3 = scmp.lt.u32.totalorder %s792_s16, %s889_s1  ;;  %p536_p6 = scmp.lt.u32.totalorder %s534_s26, %s529_s4 }
  0x38   : > { %p532_p11 = pnand %p530_p9, %p501_p5  ;;  %p538_p10 = scmp.lt.u32.totalorder %s529_s4, %s792_s16 }
  0x39   : > { %p537_p4 = por %p536_p6, %p535_p3 }
  0x3a   : > { %p533_p13 = pneg %p532_p11 }
  0x3b   : > { %p539_p12 = por %p538_p10, %p537_p4 }
  0x3d   : > { %p540_p1 = pnand %p539_p12, %p533_p13 }
  0x3f   : > { %543 = shalt.err (!%p540_p1)
}
  0x40   : > { %s544_s25 = scalar_lea.vmem %s169_s19, 64  ;;  %s648_s3 = smov [#allocation5]  }
  0x41   : > { %p545_p2 = scmp.ne.s32.totalorder %s169_s19, %s544_s25  ;;  %s549_s7 = sshll.u32 %s648_s3, 4  ;;  %s550_s7 = int_to_ptr.vmem [resolvable:$false] %s549_s7 }
  0x42   : > { %s551_s8 = scalar_lea.vmem %s550_s7, 128  ;;  %p552_p8 = scmp.lt.s32.totalorder %s169_s19, %s550_s7 }
  0x43   : > { %p547_p9 = pnand %p545_p2, %p501_p5  ;;  %p553_p7 = scmp.lt.s32.totalorder %s551_s8, %s544_s25 }
  0x45   : > { %p548_p11 = pneg %p547_p9  ;;  %p554_p3 = por %p553_p7, %p552_p8 }
  0x47   : > { %p555_p6 = pnand %p554_p3, %p548_p11 }
  0x49   : > { %558 = shalt.err (!%p555_p6)
}
  0x4a   : > { %435 = dma.hbm_to_vmem [thread:$0]  (!%p747_p0), %s792_s16, 64, %s169_s19, %s157_s30  }
  0x4b   : > { %p901_p13 = scmp.ne.s32.totalorder %s900_s29, 0 }
  0x4c   : > { %s817_s15 = sand.u32 (!%p901_p13), 1, %s629_s10   ;;  %p902_p8 = scmp.ne.s32.totalorder (!%p901_p13), %s894_s21, 0 }
  0x4d   : > { %177 = sbr.rel (%p901_p13) target bundleno = 524 (0x20c), region = 28  ;;  %s413_s18 = sshll.u32 (!%p901_p13), %s817_s15, 3 }
  0x4e   : > { %s180_s4 = scalar_lea.sflag (!%p901_p13), [#allocation3], %s817_s15  ;;  %s183_s6 = scalar_lea.vmem (!%p901_p13), [#allocation2], %s413_s18 }
  0x54   : > { %612 = dma.done.wait (%p902_p8), %s180_s4, 128  }
  0x55   : > { %614 = vsyncadd (%p902_p8), %s180_s4, 4294967168  ;;  %s414_s5 = sshll.u32 %s817_s15, 2  ;;  %s189_s29 = scalar_lea.sflag [#allocation6], %s817_s15 }
  0x56   : > { %s192_s16 = scalar_lea.vmem [#allocation5], %s414_s5 }
  0x57   : > { %616 = dma.done.wait (%p902_p8), %s189_s29, 64  }
  0x58   : > { %618 = vsyncadd (%p902_p8), %s189_s29, 4294967232  ;;  %vm222_vm0 = vcmask 1043456   ;;  %v218_v0 = vld [vmem:[%s183_s6] sm:$0xff]  ;;  %v649_v10 = vmov 0   ;;  %v650_v18 = vmov 1   ;;  %s651_s21 = smov 1   ;;  %v258_v27 = vlaneseq }
  0x59   : > { %v220_v1 = vcombine.high %v218_v0, %v218_v0  ;;  %v223_v2 = vsel %vm222_vm0, %v218_v0, 0.0  ;;  %v229_v3 = vmul.f32 %v218_v0, %v218_v0  ;;  %494 = vset.pattern.permute.xlu1 %v649_v10  ;;  %495 = vset.pattern.permute.xlu0 %v650_v18  ;;  %v241_v19 = vld [vmem:[%s192_s16] sm:$0xf]  ;;  %v652_v25 = vmov 839922192   ;;  %s422_s19 = sshll.u32 %s637_s12, 7 }
  0x5a   : > { %v256_v26 = vunpack.c.l.s4 %v652_v25  ;;  %v259_v29 = vshrl.u32 %v258_v27, 7  ;;  %s217_s30 = scalar_lea.vmem [#allocation7], %s413_s18  ;;  %s839_s28 = scalar_lea.hbm %s890_s2, %s422_s19 }
  0x5b   : > { %v224_v4 = vsel %vm222_vm0, %v220_v1, 0.0  ;;  %v231_v5 = vcombine.high %v229_v3, %v229_v3  ;;  %v233_v6 = vsel %vm222_vm0, %v229_v3, 0.0  ;;  %s295_s20 = sshll.u32 %s217_s30, 4  ;;  %s279_s25 = scalar_lea.sflag [#allocation4], %s817_s15  ;;  %s841_s20 = int_to_ptr.vmem [resolvable:$true] %s295_s20 }
  0x5c   : > { %v225_v7 = vadd.f32 %v224_v4, %v223_v2  ;;  %v257_v28 = vunpack.c.0.s8 %v256_v26  ;;  %s559_s3 = scalar_lea.vmem %s841_s20, 128  ;;  %p903_p5 = scmp.ne.s32.totalorder %s895_s22, 0 }
  0x5d   : > { %v234_v8 = vsel %vm222_vm0, %v231_v5, 0.0  ;;  %p560_p0 = scmp.ne.s32.totalorder %s841_s20, %s559_s3  ;;  %s653_s12 = smov [#allocation7]  }
  0x5e   : > { %226 = vadd.xlane.f32.xlu0 %v225_v7  ;;  %v235_v9 = vadd.f32 %v234_v8, %v233_v6  ;;  %v260_v30 = vsub.s32 %v257_v28, %v259_v29  ;;  %s563_s7 = sshll.u32 %s653_s12, 4  ;;  %s564_s7 = int_to_ptr.vmem [resolvable:$false] %s563_s7 }
  0x5f   : > { %p561_p7 = pnand %p560_p0, %p903_p5  ;;  %s565_s8 = scalar_lea.vmem %s564_s7, 256 }
  0x60   : > { %p566_p10 = scmp.lt.s32.totalorder %s841_s20, %s564_s7  ;;  %p567_p12 = scmp.lt.s32.totalorder %s565_s8, %s559_s3 }
  0x61   : > { %p562_p4 = pneg %p561_p7 }
  0x62   : > { %236 = vadd.xlane.f32.xlu0 %v235_v9  ;;  %p568_p1 = por %p567_p12, %p566_p10 }
  0x64   : > { %p569_p2 = pnand %p568_p1, %p562_p4 }
  0xeb   : > { %v227_v11 = vpop.xlane.xlu0 %226 }
  0xec   : > { %v228_v12 = vmul.f32 0.00390625, %v227_v11 }
  0xee   : > { %v239_v14 = vmul.f32 %v228_v12, %v228_v12 }
  0xef   : > { %v237_v13 = vpop.xlane.xlu0 %236 }
  0xf0   : > { %v238_v15 = vmul.f32 0.00390625, %v237_v13 }
  0xf2   : > { %v240_v16 = vsub.f32 %v238_v15, %v239_v14 }
  0xf4   : > { %v242_v17 = vadd.f32 1e-05, %v240_v16 }
  0xf6   : > { %497 = vrsqrt.f32 %v242_v17 }
 0x100   : > { %v498_v20 = vpop.eup %497 }
 0x101   : > { %v244_v21 = vmul.f32 %v498_v20, %v241_v19 }
 0x103   : > { %v245_v22 = vmul.f32 %v244_v21, %v228_v12 }
 0x105   : > { %247 = vrot.lane.b32.xlu1 %v245_v22, %s651_s21 }
 0x109   : > { %253 = vperm.xlu1 %494, %v244_v21  }
 0x177   : > { %v248_v23 = vpop.permute.xlu1 %247 }
 0x178   : > { %v250_v24 = vsub.f32 %v241_v19, %v248_v23 }
 0x17a   : > { %266 = vperm.xlu0 %495, %v250_v24  }
 0x188   : > { %v254_v31 = vpop.permute.xlu1 %253 }
 0x189   : > { %v261_v32 = vrot.slane %v254_v31, %v260_v30 }
 0x18b   : > { %v263_v34 = vmul.f32 %v261_v32, %v218_v0 }
 0x1f9   : > { %v267_v33 = vpop.permute.xlu0 %266 }
 0x1fa   : > { %v274_v35 = vrot.slane %v267_v33, %v260_v30 }
 0x1fc   : > { %v276_v36 = vadd.f32 %v274_v35, %v263_v34 }
 0x1fe   : > { %277 = vst [vmem:[%s217_s30] sm:$0xff] %v276_v36 }
 0x1ff   : > { %572 = shalt.err (!%p569_p2)
}
 0x200   : > { %s573_s15 = scalar_lea.hbm %s839_s28, 128  ;;  %s577_s6 = scalar_lea.hbm %s890_s2, 256 }
 0x201   : > { %p574_p9 = scmp.ne.s32.totalorder %s839_s28, %s573_s15  ;;  %p578_p6 = scmp.lt.u32.totalorder %s839_s28, %s890_s2 }
 0x202   : > { %p579_p13 = scmp.lt.u32.totalorder %s577_s6, %s573_s15  ;;  %p581_p0 = scmp.lt.u32.totalorder %s573_s15, %s839_s28 }
 0x203   : > { %p575_p11 = pnand %p574_p9, %p903_p5 }
 0x204   : > { %p580_p8 = por %p579_p13, %p578_p6 }
 0x205   : > { %p576_p3 = pneg %p575_p11 }
 0x206   : > { %p582_p7 = por %p581_p0, %p580_p8 }
 0x208   : > { %p583_p4 = pnand %p582_p7, %p576_p3 }
 0x20a   : > { %586 = shalt.err (!%p583_p4)
}
 0x20b   : > { %427 = dma.vmem_to_hbm [thread:$0]  (%p903_p5), %s841_s20, 128, %s839_s28, %s279_s25  }
 0x20c PF: > { %s307_s16 = sand.u32 1, %s625_s9   ;;  %p904_p10 = scmp.ne.s32.totalorder %s896_s24, 0 }
 0x20d   : > { %p905_p12 = scmp.ge.s32.totalorder %s645_s14, 2  ;;  %s308_s21 = scalar_lea.sflag [#allocation4], %s307_s16 }
 0x20f   : > { %p437_p1 = pnand %p905_p12, %p904_p10 }
 0x211   : > { %620 = dma.done.wait (!%p437_p1), %s308_s21, 128  }
 0x212   : > { %622 = vsyncadd (!%p437_p1), %s308_s21, 4294967168  ;;  %s21_s14 = sadd.s32 1, %s645_s14   ;;  %s906_s9 = smov %s629_s10 }
 0x213   : > { %p18_p2 = scmp.ge.s32.totalorder %s21_s14, 4   ;;  %s907_s10 = smov %s633_s11 }
 0x214   : > { %s908_s11 = smov %s725_s23  ;;  %s909_s12 = smov %s641_s13 }
 0x215   : > { %s910_s13 = smov %s912_s17  ;;  %20 = sbr.rel (!%p18_p2) target bundleno = 8 (0x8), region = 86 }
 0x21c   :  { %313 = vsyncpa [#allocation3], 1 }
 0x21d   :  { %315 = vsyncpa [#allocation3 + $0x1], 1 }
 0x21e   :  { %316 = vsyncpa [#allocation6], 1 }
 0x21f   :  { %318 = vsyncpa [#allocation6 + $0x1], 1 }
 0x220   :  { %319 = vsyncpa [#allocation4], 1 }
 0x221   :  { %321 = vsyncpa [#allocation4 + $0x1], 1 }

</bundles_post_ra>
